<compile_context>
chip_gen: v7x
topology: tpu7x:2x2x1
jax: 0.10.0
libtpu: 0.0.40
codegen_flags: <defaults>
</compile_context>

<pallas_src>
import jax
import jax.numpy as jnp
from jax.experimental import pallas as pl
from jax.experimental.pallas import tpu as pltpu

LANE = 128
SUBLANE_BF16 = 16


def _round_up(x, m):
    return ((x + m - 1) // m) * m


def _make_kernel(num_layers, input_size, vpad, tile_b, batch_total, out_features):
    """Fused (embedding + MLP) forward with in-kernel dim=0 log-softmax."""
    kv = input_size * vpad

    def kernel(idx_ref, m0_ref, b0_ref, *rest):
        n_tail = 2 * (num_layers - 1)
        param_refs = rest[:n_tail]
        out_ref, m_sc, l_sc = rest[n_tail:]

        phase = pl.program_id(0)   # 0: accumulate softmax stats, 1: write normalized
        tile = pl.program_id(1)

        # ---- init cross-tile reduction state once ----
        @pl.when((phase == 0) & (tile == 0))
        def _():
            m_sc[...] = jnp.full(m_sc.shape, -jnp.inf, m_sc.dtype)
            l_sc[...] = jnp.zeros(l_sc.shape, l_sc.dtype)

        # ---- fused embedding gather + layer_0: flat one-hot @ M0 (single MXU op) ----
        idx = idx_ref[...]                                            # (tile_b, K) int32
        lane = jax.lax.broadcasted_iota(jnp.int32, (tile_b, kv), 1)
        hit = None
        for k in range(input_size):                                   # static, small
            eq = lane == (idx[:, k:k + 1] + k * vpad)
            hit = eq if hit is None else jnp.logical_or(hit, eq)
        onehot = hit.astype(jnp.bfloat16)                             # direct bool->bf16

        h = jnp.dot(onehot, m0_ref[...], preferred_element_type=jnp.float32)
        h = h + b0_ref[...]                                           # f32 bias (VPU)
        if num_layers > 1:
            h = jnp.maximum(h, 0.0)                                   # relu_0

        # ---- remaining Linear (+ReLU) layers: bf16 MXU, f32 accumulate ----
        for li in range(1, num_layers):
            w = param_refs[2 * (li - 1)][...]                         # bf16 (in_p, out_p)
            b = param_refs[2 * (li - 1) + 1][...]                     # f32  (1, out_p)
            h = jnp.dot(h.astype(jnp.bfloat16), w,
                        preferred_element_type=jnp.float32) + b
            if li < num_layers - 1:
                h = jnp.maximum(h, 0.0)

        # ---- phase 0: online per-column (dim=0) max / sum-exp, padded rows masked ----
        @pl.when(phase == 0)
        def _():
            row = jax.lax.broadcasted_iota(jnp.int32, h.shape, 0) + tile * tile_b
            h_m = jnp.where(row < batch_total, h, -jnp.inf)
            m_prev = m_sc[...]
            m_new = jnp.maximum(m_prev, jnp.max(h_m, axis=0, keepdims=True))
            # NOTE: requires at least one real batch row (B >= 1); with ceil-division
            # tiling the first tile always has valid rows, so m_new stays finite.
            l_sc[...] = (l_sc[...] * jnp.exp(m_prev - m_new)
                         + jnp.sum(jnp.exp(h_m - m_new), axis=0, keepdims=True))
            m_sc[...] = m_new

        # ---- phase 1: write already-normalized logits (only real columns) ----
        @pl.when(phase == 1)
        def _():
            lse = m_sc[...] + jnp.log(l_sc[...])                      # (1, out_pad)
            out_ref[...] = (h - lse)[:, :out_features]

    return kernel


def prepare_params(embedding_table, weights, biases, input_size, embedded_size):
    """One-time parameter prep: fuse embedding into layer_0, pad, cast to bf16.

    Run this ONCE per set of weights (not per forward call): it contains the
    O(K*V*E*h1) einsum and all padding/cast work.
    """
    num_layers = len(weights)
    V, E = embedding_table.shape
    assert E == embedded_size
    widths = [w.shape[1] for w in weights]
    widths_pad = [_round_up(s, LANE) for s in widths]
    vpad = _round_up(V, SUBLANE_BF16)          # pad V only to bf16 sublane pack
    kv = input_size * vpad
    h1_pad = widths_pad[0]

    # VMEM residency guard (v7x has only 64 MiB physical VMEM, 32 MiB default scoped).
    m0_bytes = kv * h1_pad * 2
    if m0_bytes > 16 * 1024 * 1024:
        # TODO(synk): tile the vocabulary / DMA-gather M0 instead of keeping it resident.
        raise ValueError(f"fused layer-0 weight too large for resident VMEM: {m0_bytes} B")

    # Fused embedding + layer_0:  M0[k*Vpad + v, :] = emb_table[v] @ W0[k*E:(k+1)*E, :]
    w0 = weights[0].astype(jnp.float32).reshape(input_size, embedded_size, widths[0])
    m0 = jnp.einsum('ve,keh->kvh', embedding_table.astype(jnp.float32), w0)
    m0 = jnp.pad(m0, ((0, 0), (0, vpad - V), (0, h1_pad - widths[0])))
    params = [m0.reshape(kv, h1_pad).astype(jnp.bfloat16),
              jnp.pad(biases[0].astype(jnp.float32),
                      (0, h1_pad - widths[0])).reshape(1, h1_pad)]
    prev, prev_pad = widths[0], h1_pad
    for li in range(1, num_layers):
        w = jnp.pad(weights[li].astype(jnp.float32),
                    ((0, prev_pad - prev), (0, widths_pad[li] - widths[li])))
        b = jnp.pad(biases[li].astype(jnp.float32),
                    (0, widths_pad[li] - widths[li])).reshape(1, widths_pad[li])
        params += [w.astype(jnp.bfloat16), b]
        prev, prev_pad = widths[li], widths_pad[li]

    dims = dict(num_layers=num_layers, input_size=input_size, vpad=vpad,
                out_features=widths[-1], out_pad=widths_pad[-1])
    return params, dims


def dense_net_classifier_forward(indices, prepared, tile_b=None):
    """Forward pass of DenseNetClassifier.  indices: (B, input_size) int32."""
    params, dims = prepared
    B, K = indices.shape
    assert K == dims['input_size']
    assert B >= 1

    # Batch tiling: 512-row tiles fill the 256-row MXU M-dim (v6e/v7x) and amortize
    # per-grid-step overhead; small batches use a single tile.
    if tile_b is None:
        tile_b = 512 if B >= 512 else _round_up(B, 8)
    tile_b = _round_up(tile_b, 8)
    n_tiles = -(-B // tile_b)
    b_pad = n_tiles * tile_b

    idx = indices.astype(jnp.int32)
    if b_pad != B:
        idx = jnp.pad(idx, ((0, b_pad - B), (0, 0)))   # padded rows masked in-kernel

    kernel = _make_kernel(dims['num_layers'], K, dims['vpad'], tile_b, B,
                          dims['out_features'])

    def _const_map(ndim):
        zeros = (0,) * ndim
        return lambda p, i: zeros

    in_specs = [pl.BlockSpec((tile_b, K), lambda p, i: (i, 0))]
    in_specs += [pl.BlockSpec(prm.shape, _const_map(prm.ndim)) for prm in params]

    out_f = dims['out_features']
    out = pl.pallas_call(
        kernel,
        grid=(2, n_tiles),          # phase 0: softmax stats, phase 1: normalized write
        in_specs=in_specs,
        # Phase 0 maps every step to block 0 and never stores, so nothing is
        # flushed until phase 1 overwrites each block with normalized data.
        out_specs=pl.BlockSpec((tile_b, out_f), lambda p, i: (i * p, 0)),
        out_shape=jax.ShapeDtypeStruct((b_pad, out_f), jnp.float32),
        scratch_shapes=[pltpu.VMEM((1, dims['out_pad']), jnp.float32),   # running col max
                        pltpu.VMEM((1, dims['out_pad']), jnp.float32)],  # running sum-exp
        compiler_params=pltpu.CompilerParams(
            # Both axes carry the running dim=0 softmax state -> "arbitrary".
            # TODO(synk): on v7x, split the tile axis across the 2 TensorCores with
            # per-core (m, l) partials combined (CMEM/core barrier) before phase 1.
            dimension_semantics=("arbitrary", "arbitrary"),
            vmem_limit_bytes=32 * 1024 * 1024,
        ),
    )(idx, *params)

    return out[:B] if b_pad != B else out


def init_params(key, vector_size, embedded_size, input_size, layers):
    """Deterministic synthetic parameter init (shapes match nn.Module.__init__)."""
    keys = jax.random.split(key, 1 + 2 * len(layers))
    embedding_table = jax.random.normal(keys[0], (vector_size, embedded_size),
                                        dtype=jnp.float32)
    weights, biases = [], []
    in_size = input_size * embedded_size
    for i, size in enumerate(layers):
        bound = 1.0 / jnp.sqrt(in_size)
        # Stored as (in, out) == transpose of PyTorch's (out, in) Linear weight.
        w = jax.random.uniform(keys[1 + 2 * i], (in_size, size),
                               minval=-bound, maxval=bound, dtype=jnp.float32)
        b = jax.random.uniform(keys[2 + 2 * i], (size,),
                               minval=-bound, maxval=bound, dtype=jnp.float32)
        weights.append(w)
        biases.append(b)
        in_size = size
    return embedding_table, weights, biases


def reference_forward(indices, embedding_table, weights, biases,
                      input_size, embedded_size):
    """Pure-JAX f32 reference matching the PyTorch module exactly."""
    B = indices.shape[0]
    x = jnp.take(embedding_table, indices, axis=0).reshape(
        B, input_size * embedded_size)
    h = x
    for i, (w, b) in enumerate(zip(weights, biases)):
        h = h @ w + b
        if i < len(weights) - 1:
            h = jnp.maximum(h, 0.0)
    return jax.nn.log_softmax(h, axis=0)


if __name__ == "__main__":
    # Small config consistent with the module's forward.
    input_size = 8
    vector_size = 16
    embedded_size = 4
    layers = [32, 16, 10]

    key = jax.random.PRNGKey(0)
    k_param, k_idx1, k_idx2 = jax.random.split(key, 3)

    embedding_table, weights, biases = init_params(
        k_param, vector_size, embedded_size, input_size, layers)
    prepared = prepare_params(embedding_table, weights, biases,
                              input_size, embedded_size)

    # Tolerances are loose because the kernel feeds bf16 to the MXU (f32 accumulate),
    # while the reference is pure f32.
    TOL = dict(atol=5e-2, rtol=5e-2)

    # --- test 1: small batch, single batch tile ---
    batch = 8
    idx1 = jax.random.randint(k_idx1, (batch, input_size), 0, vector_size,
                              dtype=jnp.int32)
    out1 = jax.block_until_ready(dense_net_classifier_forward(idx1, prepared))
    ref1 = reference_forward(idx1, embedding_table, weights, biases,
                             input_size, embedded_size)
    assert out1.shape == (batch, layers[-1])
    assert jnp.allclose(out1, ref1, **TOL), \
        f"mismatch (max abs err {jnp.max(jnp.abs(out1 - ref1))})"

    # --- test 2: multi-tile batch with masked padding rows (exercises the
    # cross-tile dim=0 log-softmax reduction and the two-phase normalization) ---
    batch2 = 50
    idx2 = jax.random.randint(k_idx2, (batch2, input_size), 0, vector_size,
                              dtype=jnp.int32)
    out2 = jax.block_until_ready(dense_net_classifier_forward(idx2, prepared,
                                                              tile_b=16))
    ref2 = reference_forward(idx2, embedding_table, weights, biases,
                             input_size, embedded_size)
    assert out2.shape == (batch2, layers[-1])
    assert jnp.allclose(out2, ref2, **TOL), \
        f"mismatch (max abs err {jnp.max(jnp.abs(out2 - ref2))})"

    print("KERNEL_OK")
</pallas_src>

<mosaic_0001>
module attributes {stable_mosaic.version = 11 : i64} {
  func.func @kernel(%arg0: i32, %arg1: i32, %arg2: memref<8x8xi32, #tpu.memory_space<vmem>>, %arg3: memref<128x128xbf16, #tpu.memory_space<vmem>>, %arg4: memref<1x128xf32, #tpu.memory_space<vmem>>, %arg5: memref<128x128xbf16, #tpu.memory_space<vmem>>, %arg6: memref<1x128xf32, #tpu.memory_space<vmem>>, %arg7: memref<128x128xbf16, #tpu.memory_space<vmem>>, %arg8: memref<1x128xf32, #tpu.memory_space<vmem>>, %arg9: memref<8x10xf32, #tpu.memory_space<vmem>>, %arg10: memref<1x128xf32, #tpu.memory_space<vmem>>, %arg11: memref<1x128xf32, #tpu.memory_space<vmem>>) attributes {dimension_semantics = [#tpu.dimension_semantics<arbitrary>, #tpu.dimension_semantics<arbitrary>], iteration_bounds = array<i64: 2, 1>, scalar_prefetch = 0 : i64, scratch_operands = 2 : i64, tpu.core_type = #tpu.core_type<tc>, window_params = [{transform_indices = @transform_0, window_bounds = array<i64: 8, 8>}, {pipeline_mode = #tpu.pipeline_mode<synchronous>, transform_indices = @transform_1, window_bounds = array<i64: 128, 128>}, {pipeline_mode = #tpu.pipeline_mode<synchronous>, transform_indices = @transform_2, window_bounds = array<i64: 1, 128>}, {pipeline_mode = #tpu.pipeline_mode<synchronous>, transform_indices = @transform_3, window_bounds = array<i64: 128, 128>}, {pipeline_mode = #tpu.pipeline_mode<synchronous>, transform_indices = @transform_4, window_bounds = array<i64: 1, 128>}, {pipeline_mode = #tpu.pipeline_mode<synchronous>, transform_indices = @transform_5, window_bounds = array<i64: 128, 128>}, {pipeline_mode = #tpu.pipeline_mode<synchronous>, transform_indices = @transform_6, window_bounds = array<i64: 1, 128>}, {transform_indices = @transform_7, window_bounds = array<i64: 8, 10>}]} {
    %c0_i32 = arith.constant 0 : i32
    %0 = arith.cmpi eq, %arg0, %c0_i32 : i32
    %c0_i32_0 = arith.constant 0 : i32
    %1 = arith.cmpi eq, %arg1, %c0_i32_0 : i32
    %2 = arith.andi %0, %1 : i1
    %3 = arith.extui %2 : i1 to i32
    %c0_i32_1 = arith.constant 0 : i32
    %4 = arith.cmpi ne, %3, %c0_i32_1 : i32
    scf.if %4 {
      %cst_23 = arith.constant 0xFF800000 : f32
      %84 = vector.broadcast %cst_23 : f32 to vector<1x128xf32>
      %c0_24 = arith.constant 0 : index
      %c0_25 = arith.constant 0 : index
      %85 = vector.load %arg10[%c0_24, %c0_25] : memref<1x128xf32, #tpu.memory_space<vmem>>, vector<1x128xf32>
      tpu.vector_store %arg10[%c0_24, %c0_25], %84 {strides = array<i32>} : memref<1x128xf32, #tpu.memory_space<vmem>>, vector<1x128xf32>,
      %cst_26 = arith.constant 0.000000e+00 : f32
      %86 = vector.broadcast %cst_26 : f32 to vector<1x128xf32>
      %c0_27 = arith.constant 0 : index
      %c0_28 = arith.constant 0 : index
      %87 = vector.load %arg11[%c0_27, %c0_28] : memref<1x128xf32, #tpu.memory_space<vmem>>, vector<1x128xf32>
      tpu.vector_store %arg11[%c0_27, %c0_28], %86 {strides = array<i32>} : memref<1x128xf32, #tpu.memory_space<vmem>>, vector<1x128xf32>,
    } else {
    }
    %c0 = arith.constant 0 : index
    %c0_2 = arith.constant 0 : index
    %5 = vector.load %arg2[%c0, %c0_2] : memref<8x8xi32, #tpu.memory_space<vmem>>, vector<8x8xi32>
    %6 = tpu.iota {dimensions = array<i32: 1>} : vector<8x128xi32>
    %7 = vector.extract_strided_slice %5 {offsets = [0, 0], sizes = [8, 1], strides = [1, 1]} : vector<8x8xi32> to vector<8x1xi32>
    %c0_i32_3 = arith.constant 0 : i32
    %8 = vector.broadcast %c0_i32_3 : i32 to vector<8x1xi32>
    %9 = arith.addi %7, %8 : vector<8x1xi32>
    %10 = vector.broadcast %9 : vector<8x1xi32> to vector<8x128xi32>
    %11 = arith.cmpi eq, %6, %10 : vector<8x128xi32>
    %12 = vector.extract_strided_slice %5 {offsets = [0, 1], sizes = [8, 1], strides = [1, 1]} : vector<8x8xi32> to vector<8x1xi32>
    %c16_i32 = arith.constant 16 : i32
    %13 = vector.broadcast %c16_i32 : i32 to vector<8x1xi32>
    %14 = arith.addi %12, %13 : vector<8x1xi32>
    %15 = vector.broadcast %14 : vector<8x1xi32> to vector<8x128xi32>
    %16 = arith.cmpi eq, %6, %15 : vector<8x128xi32>
    %17 = arith.ori %11, %16 : vector<8x128xi1>
    %18 = vector.extract_strided_slice %5 {offsets = [0, 2], sizes = [8, 1], strides = [1, 1]} : vector<8x8xi32> to vector<8x1xi32>
    %c32_i32 = arith.constant 32 : i32
    %19 = vector.broadcast %c32_i32 : i32 to vector<8x1xi32>
    %20 = arith.addi %18, %19 : vector<8x1xi32>
    %21 = vector.broadcast %20 : vector<8x1xi32> to vector<8x128xi32>
    %22 = arith.cmpi eq, %6, %21 : vector<8x128xi32>
    %23 = arith.ori %17, %22 : vector<8x128xi1>
    %24 = vector.extract_strided_slice %5 {offsets = [0, 3], sizes = [8, 1], strides = [1, 1]} : vector<8x8xi32> to vector<8x1xi32>
    %c48_i32 = arith.constant 48 : i32
    %25 = vector.broadcast %c48_i32 : i32 to vector<8x1xi32>
    %26 = arith.addi %24, %25 : vector<8x1xi32>
    %27 = vector.broadcast %26 : vector<8x1xi32> to vector<8x128xi32>
    %28 = arith.cmpi eq, %6, %27 : vector<8x128xi32>
    %29 = arith.ori %23, %28 : vector<8x128xi1>
    %30 = vector.extract_strided_slice %5 {offsets = [0, 4], sizes = [8, 1], strides = [1, 1]} : vector<8x8xi32> to vector<8x1xi32>
    %c64_i32 = arith.constant 64 : i32
    %31 = vector.broadcast %c64_i32 : i32 to vector<8x1xi32>
    %32 = arith.addi %30, %31 : vector<8x1xi32>
    %33 = vector.broadcast %32 : vector<8x1xi32> to vector<8x128xi32>
    %34 = arith.cmpi eq, %6, %33 : vector<8x128xi32>
    %35 = arith.ori %29, %34 : vector<8x128xi1>
    %36 = vector.extract_strided_slice %5 {offsets = [0, 5], sizes = [8, 1], strides = [1, 1]} : vector<8x8xi32> to vector<8x1xi32>
    %c80_i32 = arith.constant 80 : i32
    %37 = vector.broadcast %c80_i32 : i32 to vector<8x1xi32>
    %38 = arith.addi %36, %37 : vector<8x1xi32>
    %39 = vector.broadcast %38 : vector<8x1xi32> to vector<8x128xi32>
    %40 = arith.cmpi eq, %6, %39 : vector<8x128xi32>
    %41 = arith.ori %35, %40 : vector<8x128xi1>
    %42 = vector.extract_strided_slice %5 {offsets = [0, 6], sizes = [8, 1], strides = [1, 1]} : vector<8x8xi32> to vector<8x1xi32>
    %c96_i32 = arith.constant 96 : i32
    %43 = vector.broadcast %c96_i32 : i32 to vector<8x1xi32>
    %44 = arith.addi %42, %43 : vector<8x1xi32>
    %45 = vector.broadcast %44 : vector<8x1xi32> to vector<8x128xi32>
    %46 = arith.cmpi eq, %6, %45 : vector<8x128xi32>
    %47 = arith.ori %41, %46 : vector<8x128xi1>
    %48 = vector.extract_strided_slice %5 {offsets = [0, 7], sizes = [8, 1], strides = [1, 1]} : vector<8x8xi32> to vector<8x1xi32>
    %c112_i32 = arith.constant 112 : i32
    %49 = vector.broadcast %c112_i32 : i32 to vector<8x1xi32>
    %50 = arith.addi %48, %49 : vector<8x1xi32>
    %51 = vector.broadcast %50 : vector<8x1xi32> to vector<8x128xi32>
    %52 = arith.cmpi eq, %6, %51 : vector<8x128xi32>
    %53 = arith.ori %47, %52 : vector<8x128xi1>
    %54 = arith.extui %53 : vector<8x128xi1> to vector<8x128xi32>
    %55 = arith.sitofp %54 : vector<8x128xi32> to vector<8x128xf32>
    %56 = arith.truncf %55 : vector<8x128xf32> to vector<8x128xbf16>
    %c0_4 = arith.constant 0 : index
    %c0_5 = arith.constant 0 : index
    %57 = vector.load %arg3[%c0_4, %c0_5] : memref<128x128xbf16, #tpu.memory_space<vmem>>, vector<128x128xbf16>
    %cst = arith.constant dense<0.000000e+00> : vector<8x128xf32>
    %58 = tpu.matmul %56, %57, %cst {dimension_numbers = #tpu.dot_dimension_numbers<[1], [0], [0], [1], [0, 0, 1, 1], [], []>} : vector<8x128xbf16>, vector<128x128xbf16>, vector<8x128xf32> -> vector<8x128xf32>
    %c0_6 = arith.constant 0 : index
    %c0_7 = arith.constant 0 : index
    %59 = vector.load %arg4[%c0_6, %c0_7] : memref<1x128xf32, #tpu.memory_space<vmem>>, vector<1x128xf32>
    %60 = vector.broadcast %59 : vector<1x128xf32> to vector<8x128xf32>
    %61 = arith.addf %58, %60 : vector<8x128xf32>
    %cst_8 = arith.constant 0.000000e+00 : f32
    %62 = vector.broadcast %cst_8 : f32 to vector<8x128xf32>
    %63 = arith.maximumf %61, %62 : vector<8x128xf32>
    %c0_9 = arith.constant 0 : index
    %c0_10 = arith.constant 0 : index
    %64 = vector.load %arg5[%c0_9, %c0_10] : memref<128x128xbf16, #tpu.memory_space<vmem>>, vector<128x128xbf16>
    %c0_11 = arith.constant 0 : index
    %c0_12 = arith.constant 0 : index
    %65 = vector.load %arg6[%c0_11, %c0_12] : memref<1x128xf32, #tpu.memory_space<vmem>>, vector<1x128xf32>
    %66 = arith.truncf %63 : vector<8x128xf32> to vector<8x128xbf16>
    %cst_13 = arith.constant dense<0.000000e+00> : vector<8x128xf32>
    %67 = tpu.matmul %66, %64, %cst_13 {dimension_numbers = #tpu.dot_dimension_numbers<[1], [0], [0], [1], [0, 0, 1, 1], [], []>} : vector<8x128xbf16>, vector<128x128xbf16>, vector<8x128xf32> -> vector<8x128xf32>
    %68 = vector.broadcast %65 : vector<1x128xf32> to vector<8x128xf32>
    %69 = arith.addf %67, %68 : vector<8x128xf32>
    %cst_14 = arith.constant 0.000000e+00 : f32
    %70 = vector.broadcast %cst_14 : f32 to vector<8x128xf32>
    %71 = arith.maximumf %69, %70 : vector<8x128xf32>
    %c0_15 = arith.constant 0 : index
    %c0_16 = arith.constant 0 : index
    %72 = vector.load %arg7[%c0_15, %c0_16] : memref<128x128xbf16, #tpu.memory_space<vmem>>, vector<128x128xbf16>
    %c0_17 = arith.constant 0 : index
    %c0_18 = arith.constant 0 : index
    %73 = vector.load %arg8[%c0_17, %c0_18] : memref<1x128xf32, #tpu.memory_space<vmem>>, vector<1x128xf32>
    %74 = arith.truncf %71 : vector<8x128xf32> to vector<8x128xbf16>
    %cst_19 = arith.constant dense<0.000000e+00> : vector<8x128xf32>
    %75 = tpu.matmul %74, %72, %cst_19 {dimension_numbers = #tpu.dot_dimension_numbers<[1], [0], [0], [1], [0, 0, 1, 1], [], []>} : vector<8x128xbf16>, vector<128x128xbf16>, vector<8x128xf32> -> vector<8x128xf32>
    %76 = vector.broadcast %73 : vector<1x128xf32> to vector<8x128xf32>
    %77 = arith.addf %75, %76 : vector<8x128xf32>
    %c0_i32_20 = arith.constant 0 : i32
    %78 = arith.cmpi eq, %arg0, %c0_i32_20 : i32
    %79 = arith.extui %78 : i1 to i32
    %c0_i32_21 = arith.constant 0 : i32
    %80 = arith.cmpi ne, %79, %c0_i32_21 : i32
    scf.if %80 {
      %84 = tpu.iota {dimensions = array<i32: 0>} : vector<8x128xi32>
      %c8_i32 = arith.constant 8 : i32
      %85 = arith.muli %arg1, %c8_i32 : i32
      %86 = vector.broadcast %85 : i32 to vector<8x128xi32>
      %87 = arith.addi %84, %86 : vector<8x128xi32>
      %c8_i32_23 = arith.constant 8 : i32
      %88 = vector.broadcast %c8_i32_23 : i32 to vector<8x128xi32>
      %89 = arith.cmpi slt, %87, %88 : vector<8x128xi32>
      %cst_24 = arith.constant 0xFF800000 : f32
      %90 = vector.broadcast %cst_24 : f32 to vector<8x128xf32>
      %91 = arith.select %89, %77, %90 : vector<8x128xi1>, vector<8x128xf32>
      %c0_25 = arith.constant 0 : index
      %c0_26 = arith.constant 0 : index
      %92 = vector.load %arg10[%c0_25, %c0_26] : memref<1x128xf32, #tpu.memory_space<vmem>>, vector<1x128xf32>
      %cst_27 = arith.constant dense<0xFF800000> : vector<128xf32>
      %93 = vector.multi_reduction <maximumf>, %91, %cst_27 [0] : vector<8x128xf32> to vector<128xf32>
      %94 = vector.shape_cast %93 : vector<128xf32> to vector<1x128xf32>
      %95 = arith.maximumf %92, %94 : vector<1x128xf32>
      %c0_28 = arith.constant 0 : index
      %c0_29 = arith.constant 0 : index
      %96 = vector.load %arg11[%c0_28, %c0_29] : memref<1x128xf32, #tpu.memory_space<vmem>>, vector<1x128xf32>
      %97 = arith.subf %92, %95 : vector<1x128xf32>
      %98 = math.exp %97 : vector<1x128xf32>
      %99 = arith.mulf %96, %98 : vector<1x128xf32>
      %100 = vector.broadcast %95 : vector<1x128xf32> to vector<8x128xf32>
      %101 = arith.subf %91, %100 : vector<8x128xf32>
      %102 = math.exp %101 : vector<8x128xf32>
      %cst_30 = arith.constant dense<0.000000e+00> : vector<128xf32>
      %103 = vector.multi_reduction <add>, %102, %cst_30 [0] : vector<8x128xf32> to vector<128xf32>
      %104 = vector.shape_cast %103 : vector<128xf32> to vector<1x128xf32>
      %105 = arith.addf %99, %104 : vector<1x128xf32>
      %c0_31 = arith.constant 0 : index
      %c0_32 = arith.constant 0 : index
      %106 = vector.load %arg11[%c0_31, %c0_32] : memref<1x128xf32, #tpu.memory_space<vmem>>, vector<1x128xf32>
      tpu.vector_store %arg11[%c0_31, %c0_32], %105 {strides = array<i32>} : memref<1x128xf32, #tpu.memory_space<vmem>>, vector<1x128xf32>,
      %c0_33 = arith.constant 0 : index
      %c0_34 = arith.constant 0 : index
      %107 = vector.load %arg10[%c0_33, %c0_34] : memref<1x128xf32, #tpu.memory_space<vmem>>, vector<1x128xf32>
      tpu.vector_store %arg10[%c0_33, %c0_34], %95 {strides = array<i32>} : memref<1x128xf32, #tpu.memory_space<vmem>>, vector<1x128xf32>,
    } else {
    }
    %c1_i32 = arith.constant 1 : i32
    %81 = arith.cmpi eq, %arg0, %c1_i32 : i32
    %82 = arith.extui %81 : i1 to i32
    %c0_i32_22 = arith.constant 0 : i32
    %83 = arith.cmpi ne, %82, %c0_i32_22 : i32
    scf.if %83 {
      %c0_23 = arith.constant 0 : index
      %c0_24 = arith.constant 0 : index
      %84 = vector.load %arg10[%c0_23, %c0_24] : memref<1x128xf32, #tpu.memory_space<vmem>>, vector<1x128xf32>
      %c0_25 = arith.constant 0 : index
      %c0_26 = arith.constant 0 : index
      %85 = vector.load %arg11[%c0_25, %c0_26] : memref<1x128xf32, #tpu.memory_space<vmem>>, vector<1x128xf32>
      %86 = math.log %85 : vector<1x128xf32>
      %87 = arith.addf %84, %86 : vector<1x128xf32>
      %88 = vector.broadcast %87 : vector<1x128xf32> to vector<8x128xf32>
      %89 = arith.subf %77, %88 : vector<8x128xf32>
      %90 = vector.extract_strided_slice %89 {offsets = [0, 0], sizes = [8, 10], strides = [1, 1]} : vector<8x128xf32> to vector<8x10xf32>
      %c0_27 = arith.constant 0 : index
      %c0_28 = arith.constant 0 : index
      %91 = vector.load %arg9[%c0_27, %c0_28] : memref<8x10xf32, #tpu.memory_space<vmem>>, vector<8x10xf32>
      tpu.vector_store %arg9[%c0_27, %c0_28], %90 {strides = array<i32>} : memref<8x10xf32, #tpu.memory_space<vmem>>, vector<8x10xf32>,
    } else {
    }
    return
  }
  func.func @transform_0(%arg0: i32, %arg1: i32) -> (i32, i32) {
    %c0_i32 = arith.constant 0 : i32
    %c0_i32_0 = arith.constant 0 : i32
    return %arg1, %c0_i32 : i32, i32
  }
  func.func @transform_1(%arg0: i32, %arg1: i32) -> (i32, i32) {
    %c0_i32 = arith.constant 0 : i32
    %c0_i32_0 = arith.constant 0 : i32
    %c0_i32_1 = arith.constant 0 : i32
    return %c0_i32, %c0_i32_0 : i32, i32
  }
  func.func @transform_2(%arg0: i32, %arg1: i32) -> (i32, i32) {
    %c0_i32 = arith.constant 0 : i32
    %c0_i32_0 = arith.constant 0 : i32
    %c0_i32_1 = arith.constant 0 : i32
    return %c0_i32, %c0_i32_0 : i32, i32
  }
  func.func @transform_3(%arg0: i32, %arg1: i32) -> (i32, i32) {
    %c0_i32 = arith.constant 0 : i32
    %c0_i32_0 = arith.constant 0 : i32
    %c0_i32_1 = arith.constant 0 : i32
    return %c0_i32, %c0_i32_0 : i32, i32
  }
  func.func @transform_4(%arg0: i32, %arg1: i32) -> (i32, i32) {
    %c0_i32 = arith.constant 0 : i32
    %c0_i32_0 = arith.constant 0 : i32
    %c0_i32_1 = arith.constant 0 : i32
    return %c0_i32, %c0_i32_0 : i32, i32
  }
  func.func @transform_5(%arg0: i32, %arg1: i32) -> (i32, i32) {
    %c0_i32 = arith.constant 0 : i32
    %c0_i32_0 = arith.constant 0 : i32
    %c0_i32_1 = arith.constant 0 : i32
    return %c0_i32, %c0_i32_0 : i32, i32
  }
  func.func @transform_6(%arg0: i32, %arg1: i32) -> (i32, i32) {
    %c0_i32 = arith.constant 0 : i32
    %c0_i32_0 = arith.constant 0 : i32
    %c0_i32_1 = arith.constant 0 : i32
    return %c0_i32, %c0_i32_0 : i32, i32
  }
  func.func @transform_7(%arg0: i32, %arg1: i32) -> (i32, i32) {
    %0 = arith.muli %arg1, %arg0 : i32
    %c0_i32 = arith.constant 0 : i32
    %c0_i32_0 = arith.constant 0 : i32
    return %0, %c0_i32 : i32, i32
  }
}

</mosaic_0001>

<bundles_post_ra>
// kernel: tpu_custom_call.1
= control target key start
LH: loop header
LB: loop body
LE: loop exit
PB: predicated region body
PF: predicated region fallthrough
CT: control target
= control target key end

     0   :  { %12 = vsyncpa [#allocation5], 0  ;;  %s1637_s0 = inlined_call_operand.hbm [shape: s32[8,8], index: 0, kind: input, shape index: {}]   ;;  %s1638_s1 = inlined_call_operand.hbm [shape: bf16[128,128], index: 1, kind: input, shape index: {}]   ;;  %s1639_s2 = inlined_call_operand.vmem [shape: f32[1,128], index: 2, kind: input, shape index: {}]   ;;  %s1640_s3 = inlined_call_operand.hbm [shape: bf16[128,128], index: 3, kind: input, shape index: {}]   ;;  %s1641_s4 = inlined_call_operand.vmem [shape: f32[1,128], index: 4, kind: input, shape index: {}]   ;;  %s1642_s5 = inlined_call_operand.hbm [shape: bf16[128,128], index: 5, kind: input, shape index: {}]   ;;  %s1643_s6 = inlined_call_operand.vmem [shape: f32[1,128], index: 6, kind: input, shape index: {}]   ;;  %s1644_s7 = inlined_call_operand.hbm [shape: f32[8,10], index: 7, kind: output, shape index: {}]  }
   0x1   :  { %13 = vsyncpa [#allocation8], 0 }
   0x2   :  { %14 = vsyncpa [#allocation11], 0 }
   0x3   :  { %15 = vsyncpa [#allocation6], 0 }
   0x4   :  { %17 = vsyncpa [#allocation6 + $0x1], 0  ;;  %s1408_s24 = smov 0   ;;  %s1410_s25 = smov 0  }
   0x5   :  { %s1412_s26 = smov 0  }
   0x6 LB: > { %s1349_s27 = smov [#allocation7]   ;;  %s1648_s29 = sadd.s32 4294967295, %s1347_s26   ;;  %s1347_s26 = sphi %s1412_s26, %s23_s26   ;;  %s1343_s25 = sphi %s1410_s25, %s1661_s25   ;;  %s1339_s24 = sphi %s1408_s24, %s1660_s24  }
   0x7   : > { %s245_s28 = sshll.u32 %s1349_s27, 4  ;;  %p908_p0 = scmp.ge.s32.totalorder %s1347_s26, 1  ;;  %s246_s28 = int_to_ptr.vmem [resolvable:$true] %s245_s28 }
   0x8   : > { %p220_p1 = scmp.lt.s32.totalorder %s1347_s26, 3  ;;  %p1429_p2 = scmp.eq.s32.totalorder %s1648_s29, 0 }
   0x9   : > { %s35_s11 = sadd.s32 1, %s1343_s25  ;;  %s1171_s15 = scalar_lea.hbm %s1638_s1, 1024 }
   0xa   : > { %s1649_s8 = scalar_select %p1429_p2, 1, 0 }
   0xb   : > { %p1433_p3 = pnand %p908_p0, %p220_p1  ;;  %p1446_p6 = scmp.ge.s32.totalorder %s35_s11, 2 }
   0xc   : > { %p1172_p7 = scmp.ne.s32.totalorder %s1638_s1, %s1171_s15  ;;  %p1178_p11 = scmp.lt.u32.totalorder %s1171_s15, %s1638_s1 }
   0xd   : > { %s1650_s9 = scalar_select %p1433_p3, 1, 0 }
   0xe   : > { %p1061_p4 = pneg %p1433_p3 }
   0xf   : > { %s1652_s12 = scalar_select %p1446_p6, 1, 0 }
  0x10   : > { %p1441_p5 = pnand %p1429_p2, %p1061_p4 }
  0x12   : > { %p1458_p8 = pneg %p1441_p5 }
  0x14   : > { %p1174_p9 = pnand %p1458_p8, %p1172_p7 }
  0x16   : > { %p1175_p10 = pneg %p1174_p9 }
  0x18   : > { %p1180_p12 = pnand %p1178_p11, %p1175_p10 }
  0x1a   : > { %1183 = shalt.err (!%p1180_p12)
}
  0x1b   : > { %s1184_s21 = scalar_lea.vmem %s246_s28, 1024  ;;  %p1192_p4 = scmp.lt.s32.totalorder %s246_s28, %s246_s28 }
  0x1c   : > { %p1185_p13 = scmp.ne.s32.totalorder %s246_s28, %s1184_s21  ;;  %p1193_p2 = scmp.lt.s32.totalorder %s1184_s21, %s1184_s21 }
  0x1e   : > { %p1187_p0 = pnand %p1185_p13, %p1458_p8  ;;  %p1194_p3 = por %p1193_p2, %p1192_p4 }
  0x20   : > { %p1188_p1 = pneg %p1187_p0 }
  0x22   : > { %p1195_p6 = pnand %p1194_p3, %p1188_p1 }
  0x24   : > { %1198 = shalt.err (!%p1195_p6)
}
  0x25   : > { %s1350_s22 = smov 64   ;;  %s1351_s23 = smov 4  }
  0x26   : > { %1067 = dma.hbm_to_vmem [thread:$0]  (!%p1441_p5), %s1638_s1, 1024, %s246_s28, [#allocation8], %s1350_s22, %s1350_s22, %s1351_s23  }
  0x27   : > { %p1654_p7 = scmp.ne.s32.totalorder %s1652_s12, 0  ;;  %s1352_s14 = smov [#allocation4]  }
  0x28   : > { %s235_s15 = sshll.u32 %s1352_s14, 4  ;;  %s1353_s16 = smov [#allocation9]   ;;  %s236_s15 = int_to_ptr.vmem [resolvable:$true] %s235_s15 }
  0x29   : > { %s1663_s11 = smov (%p1654_p7, %s35_s11), 0  ;;  %s261_s17 = sshll.u32 %s1353_s16, 4  ;;  %s262_s17 = int_to_ptr.vmem [resolvable:$true] %s261_s17 }
  0x2a   : > { %s1199_s21 = scalar_lea.hbm %s1637_s0, 128 }
  0x2b   : > { %p1200_p2 = scmp.ne.s32.totalorder %s1637_s0, %s1199_s21  ;;  %p1206_p9 = scmp.lt.u32.totalorder %s1199_s21, %s1637_s0 }
  0x2d   : > { %p1202_p3 = pnand %p1200_p2, %p1458_p8 }
  0x2f   : > { %p1203_p6 = pneg %p1202_p3 }
  0x31   : > { %p1208_p10 = pnand %p1206_p9, %p1203_p6 }
  0x33   : > { %1211 = shalt.err (!%p1208_p10)
}
  0x34   : > { %s1212_s27 = scalar_lea.vmem %s236_s15, 128  ;;  %p1220_p0 = scmp.lt.s32.totalorder %s236_s15, %s236_s15 }
  0x35   : > { %p1213_p11 = scmp.ne.s32.totalorder %s236_s15, %s1212_s27  ;;  %p1221_p1 = scmp.lt.s32.totalorder %s1212_s27, %s1212_s27 }
  0x37   : > { %p1215_p12 = pnand %p1213_p11, %p1458_p8  ;;  %p1222_p4 = por %p1221_p1, %p1220_p0 }
  0x39   : > { %p1216_p13 = pneg %p1215_p12 }
  0x3b   : > { %p1223_p7 = pnand %p1222_p4, %p1216_p13 }
  0x3d   : > { %1226 = shalt.err (!%p1223_p7)
}
  0x3e   : > { %1064 = dma.hbm_to_vmem [thread:$0]  (!%p1441_p5), %s1637_s0, 128, %s236_s15, [#allocation5]  }
  0x3f   : > { %s1227_s16 = scalar_lea.hbm %s1640_s3, 1024 }
  0x40   : > { %p1228_p2 = scmp.ne.s32.totalorder %s1640_s3, %s1227_s16  ;;  %p1234_p9 = scmp.lt.u32.totalorder %s1227_s16, %s1640_s3 }
  0x42   : > { %p1230_p3 = pnand %p1228_p2, %p1458_p8 }
  0x44   : > { %p1231_p6 = pneg %p1230_p3 }
  0x46   : > { %p1236_p10 = pnand %p1234_p9, %p1231_p6 }
  0x48   : > { %1239 = shalt.err (!%p1236_p10)
}
  0x49   : > { %s1240_s12 = scalar_lea.vmem %s262_s17, 1024  ;;  %p1248_p0 = scmp.lt.s32.totalorder %s262_s17, %s262_s17 }
  0x4a   : > { %p1241_p11 = scmp.ne.s32.totalorder %s262_s17, %s1240_s12  ;;  %p1249_p1 = scmp.lt.s32.totalorder %s1240_s12, %s1240_s12 }
  0x4c   : > { %p1243_p12 = pnand %p1241_p11, %p1458_p8  ;;  %p1250_p4 = por %p1249_p1, %p1248_p0 }
  0x4e   : > { %p1244_p13 = pneg %p1243_p12 }
  0x50   : > { %p1251_p7 = pnand %p1250_p4, %p1244_p13 }
  0x52   : > { %1254 = shalt.err (!%p1251_p7)
}
  0x53   : > { %1070 = dma.hbm_to_vmem [thread:$0]  (!%p1441_p5), %s1640_s3, 1024, %s262_s17, [#allocation8], %s1350_s22, %s1350_s22, %s1351_s23  }
  0x54   : > { %s1354_s29 = smov [#allocation10]   ;;  %s1255_s16 = scalar_lea.hbm %s1642_s5, 1024 }
  0x55   : > { %s277_s30 = sshll.u32 %s1354_s29, 4  ;;  %p1256_p2 = scmp.ne.s32.totalorder %s1642_s5, %s1255_s16  ;;  %s278_s30 = int_to_ptr.vmem [resolvable:$true] %s277_s30 }
  0x56   : > { %p1262_p9 = scmp.lt.u32.totalorder %s1255_s16, %s1642_s5 }
  0x57   : > { %p1258_p3 = pnand %p1256_p2, %p1458_p8 }
  0x59   : > { %p1259_p6 = pneg %p1258_p3 }
  0x5b   : > { %p1264_p10 = pnand %p1262_p9, %p1259_p6 }
  0x5d   : > { %1267 = shalt.err (!%p1264_p10)
}
  0x5e   : > { %s1268_s17 = scalar_lea.vmem %s278_s30, 1024  ;;  %p1276_p0 = scmp.lt.s32.totalorder %s278_s30, %s278_s30 }
  0x5f   : > { %p1269_p11 = scmp.ne.s32.totalorder %s278_s30, %s1268_s17  ;;  %p1277_p1 = scmp.lt.s32.totalorder %s1268_s17, %s1268_s17 }
  0x61   : > { %p1271_p12 = pnand %p1269_p11, %p1458_p8  ;;  %p1278_p4 = por %p1277_p1, %p1276_p0 }
  0x63   : > { %p1272_p13 = pneg %p1271_p12 }
  0x65   : > { %p1279_p7 = pnand %p1278_p4, %p1272_p13 }
  0x67   : > { %1282 = shalt.err (!%p1279_p7)
}
  0x68   : > { %1073 = dma.hbm_to_vmem [thread:$0]  (!%p1441_p5), %s1642_s5, 1024, %s278_s30, [#allocation11], %s1350_s22, %s1350_s22, %s1351_s23  }
  0x69   : > { %p1655_p2 = scmp.ne.s32.totalorder %s1650_s9, 0 }
  0x6a   : > { %p1656_p8 = scmp.ne.s32.totalorder (!%p1655_p2), %s1649_s8, 0 }
  0x6b   : > { %296 = sbr.rel (%p1655_p2) target bundleno = 1030 (0x406), region = 48 }
  0x72   : > { %1322 = dma.done.wait (%p1656_p8), [#allocation5], 128  }
  0x73   : > { %1324 = vsyncadd (%p1656_p8), [#allocation5], 4294967168 }
  0x74   : > { %1326 = dma.done.wait (%p1656_p8), [#allocation8], 2048  }
  0x75   : > { %1328 = vsyncadd (%p1656_p8), [#allocation8], 4294965248 }
  0x76   : > { %1330 = dma.done.wait (%p1656_p8), [#allocation11], 1024  }
  0x77   : > { %1332 = vsyncadd (%p1656_p8), [#allocation11], 4294966272  ;;  %p337_p5 = scmp.eq.s32.totalorder %s1339_s24, 0 }
  0x78   : > { %v1355_v0 = vmov (%p337_p5), -inf   ;;  %v1356_v1 = vmov (%p337_p5), 0.0  }
  0x79   : > { %342 = sbr.rel (!%p337_p5) target bundleno = 128 (0x80), region = 68  ;;  %343 = vst [vmem:[#allocation2] sm:$0x1] (%p337_p5), %v1355_v0  ;;  %344 = vst [vmem:[#allocation3] sm:$0x1] (%p337_p5), %v1356_v1 }
  0x80 PF: > { %v345_v2 = vld [vmem:[#allocation4] sm:$0xff]  ;;  %v1357_v3 = vmov 0   ;;  %v1358_v4 = vmov 2   ;;  %v1141_v6 = vld [vmem:[#allocation7] sm:$0xff]   ;;  %v1359_v9 = vmov 0.0   ;;  %v1142_v11 = vld [vmem:[#allocation7 + $0x8] sm:$0xff]   ;;  %v346_v35 = vlaneseq }
  0x81   : > { %1132 = vset.pattern.permute.xlu0 %v1357_v3  ;;  %1134 = vset.pattern.permute.xlu1 %v1358_v4  ;;  %v358_v5 = vadd.s32 32, %v345_v2  ;;  %v352_v7 = vadd.s32 16, %v345_v2  ;;  %v364_v8 = vadd.s32 48, %v345_v2  ;;  %v370_v10 = vadd.s32 64, %v345_v2  ;;  %v1143_v15 = vld [vmem:[#allocation7 + $0x10] sm:$0xff]   ;;  %v1144_v18 = vld [vmem:[#allocation7 + $0x18] sm:$0xff]  }
  0x82   : > { %349 = vperm.xlu0 %1132, %v345_v2   ;;  %981 = vmatprep.subr.bf16.mxu0 %v1359_v9  ;;  %v1360_v12 = vmov 1   ;;  %v376_v13 = vadd.s32 80, %v345_v2  ;;  %v1361_v14 = vmov 3   ;;  %v1362_v16 = vmov 5   ;;  %v1145_v20 = vld [vmem:[#allocation7 + $0x20] sm:$0xff]   ;;  %v1146_v24 = vld [vmem:[#allocation7 + $0x28] sm:$0xff]  }
  0x83   : > { %360 = vperm.xlu1 %1134, %v358_v5   ;;  %1001 = vmatprep.subr.bf16.mxu1 %v1359_v9  ;;  %v382_v17 = vadd.s32 96, %v345_v2  ;;  %v1363_v19 = vmov 4   ;;  %v1364_v21 = vmov 7   ;;  %v1365_v22 = vmov 6   ;;  %v1147_v25 = vld [vmem:[#allocation7 + $0x30] sm:$0xff]   ;;  %v1149_v26 = vld [vmem:[#allocation9] sm:$0xff]  }
  0x84   : > { %982 = vmatpush3.bf16.msra.mxu0 %v1141_v6  ;;  %v388_v23 = vadd.s32 112, %v345_v2  ;;  %vm1366_vm0 = vmmov 0   ;;  %v1148_v27 = vld [vmem:[#allocation7 + $0x38] sm:$0xff]   ;;  %1002 = vmatpush3.bf16.msra.mxu1 %v1149_v26  ;;  %v1150_v28 = vld [vmem:[#allocation9 + $0x8] sm:$0xff]   ;;  %v1151_v29 = vld [vmem:[#allocation9 + $0x10] sm:$0xff]   ;;  %v347_v37 = vand.u32 127, %v346_v35 }
  0x85   : > { %983 = vmatprep.subr.bf16.mxu0 %v1359_v9  ;;  %997 = vmatprep.mubr.msk.bf16.mxu0 %vm1366_vm0, %v1359_v9  ;;  %v1152_v30 = vld [vmem:[#allocation9 + $0x18] sm:$0xff]   ;;  %v1153_v31 = vld [vmem:[#allocation9 + $0x20] sm:$0xff]   ;;  %v1154_v32 = vld [vmem:[#allocation9 + $0x28] sm:$0xff]   ;;  %p947_p3 = scmp.ne.s32.totalorder %s1339_s24, 0 }
  0x86   : > { %1133 = vset.pattern.permute.xlu0 %v1360_v12  ;;  %1017 = vmatprep.mubr.msk.bf16.mxu1 %vm1366_vm0, %v1359_v9  ;;  %v1155_v45 = vld [vmem:[#allocation9 + $0x30] sm:$0xff]   ;;  %v1156_v46 = vld [vmem:[#allocation9 + $0x38] sm:$0xff]   ;;  %v1157_v47 = vld [vmem:[#allocation10] sm:$0xff]  }
  0x87   : > { %1135 = vset.pattern.permute.xlu1 %v1361_v14  ;;  %354 = vperm.xlu0 %1133, %v352_v7   ;;  %v1158_v48 = vld [vmem:[#allocation10 + $0x8] sm:$0xff]   ;;  %v1159_v49 = vld [vmem:[#allocation10 + $0x10] sm:$0xff]   ;;  %v1160_v50 = vld [vmem:[#allocation10 + $0x18] sm:$0xff]  }
  0x88   : > { %366 = vperm.xlu1 %1135, %v364_v8   ;;  %984 = vmatpush3.bf16.msra.mxu0 %v1142_v11  ;;  %v1161_v51 = vld [vmem:[#allocation10 + $0x20] sm:$0xff]   ;;  %v1162_v52 = vld [vmem:[#allocation10 + $0x28] sm:$0xff]   ;;  %v920_v53 = vld [vmem:[%s1639_s2] ss:$0 sm:$0xff] }
  0x89   : > { %985 = vmatprep.subr.bf16.mxu0 %v1359_v9  ;;  %1003 = vmatprep.subr.bf16.mxu1 %v1359_v9  ;;  %v1163_v61 = vld [vmem:[#allocation10 + $0x30] sm:$0xff]   ;;  %v1164_v62 = vld [vmem:[#allocation10 + $0x38] sm:$0xff]  }
  0x8a   : > { %1004 = vmatpush3.bf16.msra.mxu1 %v1150_v28  ;;  %v929_v63 = vld [vmem:[%s1641_s4] ss:$0 sm:$0xff] }
  0x8b   : > { %1137 = vset.pattern.permute.xlu0 %v1362_v16  ;;  %1005 = vmatprep.subr.bf16.mxu1 %v1359_v9  ;;  %v938_v7 = vld [vmem:[%s1643_s6] ss:$0 sm:$0xff] }
  0x8c   : > { %1136 = vset.pattern.permute.xlu1 %v1363_v19  ;;  %378 = vperm.xlu0 %1137, %v376_v13   ;;  %v744_v19 = vld [vmem:[#allocation2] sm:$0x1] (!%p947_p3) }
  0x8d   : > { %372 = vperm.xlu1 %1136, %v370_v10   ;;  %986 = vmatpush3.bf16.msra.mxu0 %v1143_v15 }
  0x8e   : > { %987 = vmatprep.subr.bf16.mxu0 %v1359_v9  ;;  %1006 = vmatpush3.bf16.msra.mxu1 %v1151_v29 }
  0x8f   : > { %1007 = vmatprep.subr.bf16.mxu1 %v1359_v9 }
  0x90   : > { %1140 = vset.pattern.permute.xlu0 %v1364_v21 }
  0x91   : > { %1138 = vset.pattern.permute.xlu1 %v1365_v22  ;;  %988 = vmatpush3.bf16.msra.mxu0 %v1144_v18 }
  0x92   : > { %384 = vperm.xlu1 %1138, %v382_v17   ;;  %989 = vmatprep.subr.bf16.mxu0 %v1359_v9  ;;  %v759_v17 = vshrl.u32 (!%p947_p3), %v346_v35, 7 }
  0x93   : > { %1008 = vmatpush3.bf16.msra.mxu1 %v1152_v30 }
  0x94   : > { %1009 = vmatprep.subr.bf16.mxu1 %v1359_v9 }
  0x95   : > { %990 = vmatpush3.bf16.msra.mxu0 %v1145_v20 }
  0x96   : > { %1139 = vset.pattern.permute.xlu1 %v1364_v21  ;;  %991 = vmatprep.subr.bf16.mxu0 %v1359_v9  ;;  %v760_v21 = vsub.s32 (!%p947_p3), 0, %v759_v17 }
  0x97   : > { %390 = vperm.xlu1 %1139, %v388_v23   ;;  %1010 = vmatpush3.bf16.msra.mxu1 %v1153_v31 }
  0x98   : > { %1011 = vmatprep.subr.bf16.mxu1 %v1359_v9 }
  0x99   : > { %992 = vmatpush3.bf16.msra.mxu0 %v1146_v24 }
  0x9a   : > { %993 = vmatprep.subr.bf16.mxu0 %v1359_v9 }
  0x9b   : > { %1012 = vmatpush3.bf16.msra.mxu1 %v1154_v32 }
  0x9c   : > { %1013 = vmatprep.subr.bf16.mxu1 %v1359_v9 }
  0x9d   : > { %994 = vmatpush3.bf16.msra.mxu0 %v1147_v25 }
  0x9e   : > { %995 = vmatprep.subr.bf16.mxu0 %v1359_v9 }
  0x9f   : > { %1014 = vmatpush3.bf16.msra.mxu1 %v1155_v45 }
  0xa0   : > { %1015 = vmatprep.subr.bf16.mxu1 %v1359_v9 }
  0xa1   : > { %996 = vmatpush3.bf16.msra.mxu0 %v1148_v27 }
  0xa2   : > { %1021 = vmatprep.subr.bf16.mxu0 %v1359_v9 }
  0xa3   : > { %1016 = vmatpush3.bf16.msra.mxu1 %v1156_v46 }
 0x101   : > { %v350_v33 = vpop.permute.xlu0 %349 }
 0x102   : > { %v361_v34 = vpop.permute.xlu1 %360  ;;  %vm351_vm1 = vcmp.eq.s32.totalorder %v347_v37, %v350_v33  ;;  %v752_v33 = vld [vmem:[#allocation3] sm:$0x1] (!%p947_p3) }
 0x103   : > { %vm362_vm4 = vcmp.eq.s32.totalorder %v347_v37, %v361_v34 }
 0x106   : > { %v355_v36 = vpop.permute.xlu0 %354 }
 0x107   : > { %v367_v38 = vpop.permute.xlu1 %366  ;;  %vm356_vm2 = vcmp.eq.s32.totalorder %v347_v37, %v355_v36 }
 0x108   : > { %vm357_vm3 = vmor %vm351_vm1, %vm356_vm2  ;;  %vm368_vm6 = vcmp.eq.s32.totalorder %v347_v37, %v367_v38 }
 0x109   : > { %vm363_vm5 = vmor %vm357_vm3, %vm362_vm4 }
 0x10a   : > { %vm369_vm8 = vmor %vm363_vm5, %vm368_vm6 }
 0x10b   : > { %v379_v40 = vpop.permute.xlu0 %378 }
 0x10c   : > { %v373_v39 = vpop.permute.xlu1 %372  ;;  %vm380_vm10 = vcmp.eq.s32.totalorder %v347_v37, %v379_v40 }
 0x10d   : > { %vm374_vm7 = vcmp.eq.s32.totalorder %v347_v37, %v373_v39 }
 0x10e   : > { %vm375_vm9 = vmor %vm369_vm8, %vm374_vm7 }
 0x10f   : > { %vm381_vm12 = vmor %vm375_vm9, %vm380_vm10 }
 0x111   : > { %v385_v41 = vpop.permute.xlu1 %384 }
 0x112   : > { %vm386_vm11 = vcmp.eq.s32.totalorder %v347_v37, %v385_v41 }
 0x113   : > { %vm387_vm13 = vmor %vm381_vm12, %vm386_vm11 }
 0x116   : > { %v391_v42 = vpop.permute.xlu1 %390 }
 0x117   : > { %vm392_vm14 = vcmp.eq.s32.totalorder %v347_v37, %v391_v42 }
 0x118   : > { %vm393_vm15 = vmor %vm387_vm13, %vm392_vm14 }
 0x119   : > { %v919_v43 = vsel %vm393_vm15, 1.0, %v1359_v9 }
 0x11a   : > { %v396_v44 = vpack.c.bf16 %v919_v43, %v919_v43 }
 0x11c   : > { %998 = vmatmul.mubr.bf16.vlgmr.msra.gmra.mrb[0].mxu0 %v396_v44 }
 0x11d   : > { %1037 = vmatprep.mubr.msk.bf16.mxu0 %vm1366_vm0, %v1359_v9  ;;  %1022 = vmatpush3.bf16.msra.mxu0 %v1157_v47 }
 0x11e   : > { %1023 = vmatprep.subr.bf16.mxu0 %v1359_v9 }
 0x121   : > { %1024 = vmatpush3.bf16.msra.mxu0 %v1158_v48 }
 0x122   : > { %1025 = vmatprep.subr.bf16.mxu0 %v1359_v9 }
 0x125   : > { %1026 = vmatpush3.bf16.msra.mxu0 %v1159_v49 }
 0x126   : > { %1027 = vmatprep.subr.bf16.mxu0 %v1359_v9 }
 0x129   : > { %1028 = vmatpush3.bf16.msra.mxu0 %v1160_v50 }
 0x12a   : > { %1029 = vmatprep.subr.bf16.mxu0 %v1359_v9 }
 0x12d   : > { %1030 = vmatpush3.bf16.msra.mxu0 %v1161_v51 }
 0x12e   : > { %1031 = vmatprep.subr.bf16.mxu0 %v1359_v9 }
 0x131   : > { %1032 = vmatpush3.bf16.msra.mxu0 %v1162_v52 }
 0x132   : > { %1033 = vmatprep.subr.bf16.mxu0 %v1359_v9 }
 0x135   : > { %1034 = vmatpush3.bf16.msra.mxu0 %v1163_v61 }
 0x136   : > { %1035 = vmatprep.subr.bf16.mxu0 %v1359_v9 }
 0x139   : > { %1036 = vmatpush3.bf16.msra.mxu0 %v1164_v62 }
 0x1ef   : > { %v502_v54 = vpop.f32.mrb[0].mxu0 }
 0x1f0   : > { %v503_v55 = vadd.f32 %v920_v53, %v502_v54  ;;  %v999_v56 = vpop.f32.mrb[1].mxu0 }
 0x1f1   : > { %v505_v57 = vpop.f32.mrb[2].mxu0 }
 0x1f2   : > { %v508_v58 = vmax.f32 %v503_v55, 0.0  ;;  %v1000_v59 = vpop.f32.mrb[3].mxu0 }
 0x1f4   : > { %v526_v60 = vpack.c.bf16 %v508_v58, %v508_v58 }
 0x1f6   : > { %1018 = vmatmul.mubr.bf16.vlgmr.msra.gmra.mrb[0].mxu1 %v526_v60 }
 0x2c9   : > { %v615_v0 = vpop.f32.mrb[0].mxu1 }
 0x2ca   : > { %v616_v1 = vadd.f32 %v929_v63, %v615_v0  ;;  %v1019_v2 = vpop.f32.mrb[1].mxu1 }
 0x2cb   : > { %v618_v3 = vpop.f32.mrb[2].mxu1 }
 0x2cc   : > { %v621_v4 = vmax.f32 %v616_v1, 0.0  ;;  %v1020_v5 = vpop.f32.mrb[3].mxu1 }
 0x2ce   : > { %v639_v6 = vpack.c.bf16 %v621_v4, %v621_v4 }
 0x2d0   : > { %1038 = vmatmul.mubr.bf16.vlgmr.msra.gmra.mrb[4].mxu0 %v639_v6 }
 0x3a0   : > { %736 = sbr.rel (%p947_p3) target bundleno = 980 (0x3d4), region = 72 }
 0x3a3   : > { %v728_v8 = vpop.f32.mrb[4].mxu0 }
 0x3a4   : > { %v729_v9 = vadd.f32 %v938_v7, %v728_v8  ;;  %v1039_v10 = vpop.f32.mrb[5].mxu0 }
 0x3a5   : > { %v731_v11 = vpop.f32.mrb[6].mxu0 }
 0x3a6   : > { %v1040_v12 = vpop.f32.mrb[7].mxu0  ;;  %v745_v13 = vrot.slane (!%p947_p3), %v729_v9, 4 }
 0x3a8   : > { %v746_v14 = vmax.f32 %v729_v9, %v745_v13 }
 0x3aa   : > { %v747_v15 = vrot.slane %v746_v14, 2 }
 0x3ac   : > { %v748_v16 = vmax.f32 %v746_v14, %v747_v15 }
 0x3ae   : > { %v749_v18 = vrot.slane %v748_v16, 1 }
 0x3b0   : > { %v750_v20 = vmax.f32 %v748_v16, %v749_v18 }
 0x3b2   : > { %v751_v22 = vmax.f32 %v744_v19, %v750_v20 }
 0x3b4   : > { %v761_v23 = vrot.slane %v751_v22, %v760_v21  ;;  %774 = vst [vmem:[#allocation2] sm:$0x1] %v751_v22  ;;  %v753_v25 = vsub.f32 %v744_v19, %v751_v22 }
 0x3b6   : > { %v763_v24 = vsub.f32 %v729_v9, %v761_v23  ;;  %v754_v27 = vmul.f32 1.442695, %v753_v25 }
 0x3b8   : > { %v764_v26 = vmul.f32 1.442695, %v763_v24 }
 0x3ba   : > { %1165 = vpow2.f32 %v764_v26 }
 0x3bb   : > { %1167 = vpow2.f32 %v754_v27 }
 0x3c4   : > { %v1166_v28 = vpop.eup %1165 }
 0x3c5   : > { %v766_v29 = vrot.slane %v1166_v28, 4  ;;  %v1168_v32 = vpop.eup %1167 }
 0x3c6   : > { %v756_v36 = vmul.f32 %v1168_v32, %v752_v33 }
 0x3c7   : > { %v767_v30 = vadd.f32 %v1166_v28, %v766_v29 }
 0x3c9   : > { %v768_v31 = vrot.slane %v767_v30, 2 }
 0x3cb   : > { %v769_v34 = vadd.f32 %v768_v31, %v767_v30 }
 0x3cd   : > { %v770_v37 = vrot.slane %v769_v34, 1 }
 0x3cf   : > { %v771_v38 = vadd.f32 %v770_v37, %v769_v34 }
 0x3d1   : > { %v772_v39 = vadd.f32 %v771_v38, %v756_v36 }
 0x3d3   : > { %773 = vst [vmem:[#allocation3] sm:$0x1] %v772_v39 }
 0x3d4 PF: > { %p948_p6 = scmp.ne.s32.totalorder %s1339_s24, 1 }
 0x3d5   : > { %v786_v41 = vshrl.u32 (!%p948_p6), %v346_v35, 7  ;;  %v779_v43 = vld [vmem:[#allocation2] sm:$0x1] (!%p948_p6)  ;;  %vm791_vm0 = vcmask (!%p948_p6), 80896  }
 0x3d6   : > { %778 = sbr.rel (%p948_p6) target bundleno = 1007 (0x3ef), region = 76 }
 0x3d7   : > { %v787_v45 = vsub.s32 (!%p948_p6), 0, %v786_v41 }
 0x3da   : > { %v780_v40 = vld [vmem:[#allocation3] sm:$0x1] (!%p948_p6) }
 0x3db   : > { %1169 = vlog2.f32 (!%p948_p6), %v780_v40 }
 0x3e5   : > { %v1170_v42 = vpop.eup %1169 }
 0x3e6   : > { %v782_v44 = vmul.f32 0.6931472, %v1170_v42 }
 0x3e8   : > { %v783_v46 = vadd.f32 %v782_v44, %v779_v43 }
 0x3ea   : > { %v788_v47 = vrot.slane %v783_v46, %v787_v45 }
 0x3ec   : > { %v790_v48 = vsub.f32 %v729_v9, %v788_v47 }
 0x3ee   : > { %792 = vst.msk [vmem:[#allocation12] sm:$0xff] %vm791_vm0, %v790_v48 }
 0x3ef PF: > { %s1657_s27 = sadd.s32 4294967295, %s1347_s26   ;;  %s1367_s24 = smov [#allocation12]  }
 0x3f0   : > { %p1603_p9 = scmp.eq.s32.totalorder %s1657_s27, 1  ;;  %s808_s30 = sshll.u32 %s1367_s24, 4  ;;  %s809_s30 = int_to_ptr.vmem [resolvable:$true] %s808_s30 }
 0x3f1   : > { %s1283_s13 = scalar_lea.vmem %s809_s30, 128  ;;  %s1289_s14 = scalar_lea.vmem %s809_s30, 256 }
 0x3f2   : > { %p1284_p10 = scmp.ne.s32.totalorder %s809_s30, %s1283_s13  ;;  %p1290_p13 = scmp.lt.s32.totalorder %s809_s30, %s809_s30 }
 0x3f3   : > { %p1291_p0 = scmp.lt.s32.totalorder %s1289_s14, %s1283_s13 }
 0x3f4   : > { %p1285_p11 = pnand %p1284_p10, %p1603_p9 }
 0x3f5   : > { %p1292_p1 = por %p1291_p0, %p1290_p13 }
 0x3f6   : > { %p1286_p12 = pneg %p1285_p11 }
 0x3f8   : > { %p1293_p4 = pnand %p1292_p1, %p1286_p12 }
 0x3fa   : > { %1296 = shalt.err (!%p1293_p4)
}
 0x3fb   : > { %s1297_s20 = scalar_lea.hbm %s1644_s7, 128 }
 0x3fc   : > { %p1298_p7 = scmp.ne.s32.totalorder %s1644_s7, %s1297_s20  ;;  %p1303_p5 = scmp.lt.u32.totalorder %s1297_s20, %s1644_s7 }
 0x3fe   : > { %p1299_p2 = pnand %p1298_p7, %p1603_p9 }
 0x400   : > { %p1300_p8 = pneg %p1299_p2 }
 0x402   : > { %p1305_p3 = pnand %p1303_p5, %p1300_p8 }
 0x404   : > { %1308 = shalt.err (!%p1305_p3)
}
 0x405   : > { %1058 = dma.vmem_to_hbm [thread:$0]  (%p1603_p9), %s809_s30, 128, %s1644_s7, [#allocation6]  }
 0x406 PF: > { %p1087_p6 = scmp.ge.s32.totalorder %s1347_s26, 2  ;;  %s1659_s9 = sadd.s32 4294967294, %s1347_s26  }
 0x407   : > { %p1088_p10 = scmp.eq.s32.totalorder %s1659_s9, 1 }
 0x409   : > { %p1075_p11 = pnand %p1088_p10, %p1087_p6 }
 0x40b   : > { %1334 = dma.done.wait (!%p1075_p11), [#allocation6], 128  }
 0x40c   : > { %1336 = vsyncadd (!%p1075_p11), [#allocation6], 4294967168  ;;  %s23_s26 = sadd.s32 1, %s1347_s26   ;;  %s1660_s24 = smov %s1343_s25 }
 0x40d   : > { %p20_p12 = scmp.ge.s32.totalorder %s23_s26, 4   ;;  %s1661_s25 = smov %s1663_s11 }
 0x40f   :  { %22 = sbr.rel (!%p20_p12) target bundleno = 6 (0x6), region = 110 }
 0x416   :  { %826 = vsyncpa [#allocation5], 1 }
 0x417   :  { %828 = vsyncpa [#allocation5 + $0x1], 1 }
 0x418   :  { %829 = vsyncpa [#allocation8], 1 }
 0x419   :  { %830 = vsyncpa [#allocation11], 1 }
 0x41a   :  { %831 = vsyncpa [#allocation6], 1 }
 0x41b   :  { %833 = vsyncpa [#allocation6 + $0x1], 1 }

</bundles_post_ra>
